<compile_context>
chip_gen: v7x
topology: tpu7x:2x2x1
jax: 0.10.0
libtpu: 0.0.40
codegen_flags: <defaults>
</compile_context>

<pallas_src>
import math

import jax
import jax.numpy as jnp
from jax import lax
from jax.experimental import pallas as pl
from jax.experimental.pallas import tpu as pltpu


_NEG_BIG = -1e30  # finite stand-in for -inf: no NaN on fully-masked rows


# ---------------------------------------------------------------------------
# Tiling helpers
# ---------------------------------------------------------------------------
def _vmem_limit_bytes():
    """Generation-aware VMEM limit (~70% of capacity), with a safe fallback."""
    try:
        info = pltpu.get_tpu_info()
        cap = getattr(info, "vmem_capacity_bytes", None)
        if cap:
            return int(cap * 0.7)
    except Exception:
        pass
    return 64 * 1024 * 1024


def _pick_q_tile(s_q):
    """Largest convenient q tile (prefer 256/512 rows for the 2x256 MXU)."""
    if s_q <= 512:
        return s_q
    for t in (512, 256, 128, 64, 32, 16, 8):
        if s_q % t == 0:
            return t
    return s_q


def _pick_k_tile(s_k):
    """K tile: multiple of 128 lanes (prefer >=256) or full S_k."""
    if s_k <= 1024:
        return s_k
    for t in (1024, 512, 256, 128):
        if s_k % t == 0:
            return t
    return s_k


def _pick_head_tile(n_heads, per_head_bytes, budget_bytes):
    """Largest divisor of n_heads whose per-step VMEM estimate fits the budget."""
    best = 1
    for cand in range(1, n_heads + 1):
        if n_heads % cand == 0 and cand * per_head_bytes <= budget_bytes:
            best = cand
    return best


def _keep_mask(mv):
    return mv if mv.dtype == jnp.bool_ else (mv != 0)


# ----------------------------------------------------------------------------
# Kernel 1: head/q tiled, full S_k per step, emits attention weights
#           (exact module semantics).
# ----------------------------------------------------------------------------
def _make_attn_kernel(use_mask, mm_dtype):
    def kernel(*refs):
        if use_mask:
            q_ref, k_ref, v_ref, m_ref, o_ref, w_ref = refs
        else:
            q_ref, k_ref, v_ref, o_ref, w_ref = refs

        q = q_ref[...]  # (th, tq, D)
        k = k_ref[...]  # (th, S_k, D)
        v = v_ref[...]  # (th, S_k, D)

        scale = 1.0 / math.sqrt(k.shape[-1])
        q = q * jnp.asarray(scale, q.dtype)
        if mm_dtype is not None:           # optional bf16 MXU path, f32 acc
            q = q.astype(mm_dtype)
            k = k.astype(mm_dtype)
            v = v.astype(mm_dtype)

        # (th, tq, S_k): contract D, batch over heads -> pure MXU pushes.
        s = lax.dot_general(
            q, k, dimension_numbers=(((2,), (2,)), ((0,), (0,))),
            preferred_element_type=jnp.float32)

        if use_mask:
            keep = _keep_mask(m_ref[...])                  # (tq, S_k)
            s = jnp.where(keep[None, :, :], s, jnp.float32(_NEG_BIG))

        # Numerically stable softmax over S_k; exact normalization because the
        # weights are a user-visible output (must sum to 1).
        m = jnp.max(s, axis=-1, keepdims=True)
        e = jnp.exp(s - m)
        denom = jnp.sum(e, axis=-1, keepdims=True)
        w = e * (1.0 / denom)

        # TODO(synk): dropout on attn_weights not implemented (dropout_p=0.0).

        out = lax.dot_general(
            w.astype(v.dtype), v,
            dimension_numbers=(((2,), (1,)), ((0,), (0,))),
            preferred_element_type=jnp.float32)            # (th, tq, D)

        w_ref[...] = w.astype(w_ref.dtype)
        o_ref[...] = out.astype(o_ref.dtype)

    return kernel


# ----------------------------------------------------------------------------
# Kernel 2: flash-style (heads, S_q and S_k tiled, online softmax), output only.
# ----------------------------------------------------------------------------
def _make_flash_kernel(use_mask, mm_dtype):
    def kernel(*refs):
        if use_mask:
            q_ref, k_ref, v_ref, m_ref, o_ref, qs_sc, m_sc, l_sc, acc_sc = refs
        else:
            q_ref, k_ref, v_ref, o_ref, qs_sc, m_sc, l_sc, acc_sc = refs

        ki = pl.program_id(3)

        @pl.when(ki == 0)
        def _():
            # q is resident across the whole S_k loop: scale once, cache in
            # VMEM scratch instead of re-multiplying every ki step.
            scale = 1.0 / math.sqrt(k_ref.shape[-1])
            qs_sc[...] = q_ref[...] * jnp.asarray(scale, q_ref.dtype)
            m_sc[...] = jnp.full_like(m_sc, _NEG_BIG)
            l_sc[...] = jnp.zeros_like(l_sc)
            acc_sc[...] = jnp.zeros_like(acc_sc)

        q = qs_sc[...]  # (th, tq, D), already scaled
        k = k_ref[...]  # (th, tk, D)
        v = v_ref[...]  # (th, tk, D)
        if mm_dtype is not None:
            q = q.astype(mm_dtype)
            k = k.astype(mm_dtype)
            v = v.astype(mm_dtype)

        s = lax.dot_general(
            q, k, dimension_numbers=(((2,), (2,)), ((0,), (0,))),
            preferred_element_type=jnp.float32)            # (th, tq, tk)

        if use_mask:
            keep = _keep_mask(m_ref[...])                  # (tq, tk)
            s = jnp.where(keep[None, :, :], s, jnp.float32(_NEG_BIG))

        m_prev = m_sc[...]
        m_new = jnp.maximum(m_prev, jnp.max(s, axis=-1, keepdims=True))
        alpha = jnp.exp(m_prev - m_new)
        p = jnp.exp(s - m_new)

        l_sc[...] = alpha * l_sc[...] + jnp.sum(p, axis=-1, keepdims=True)
        acc_sc[...] = alpha * acc_sc[...] + lax.dot_general(
            p.astype(v.dtype), v,
            dimension_numbers=(((2,), (1,)), ((0,), (0,))),
            preferred_element_type=jnp.float32)
        m_sc[...] = m_new

        @pl.when(ki == pl.num_programs(3) - 1)
        def _():
            # Exact normalization at finalize (off the inner-loop critical path).
            o_ref[...] = (acc_sc[...] * (1.0 / l_sc[...])).astype(o_ref.dtype)

    return kernel


# ----------------------------------------------------------------------------
# Wrapper
# ----------------------------------------------------------------------------
def self_attention(qry, key, val, attn_mask=None, *, return_weights=True,
                   q_tile=None, k_tile=None, head_tile=None,
                   prefer_bf16_matmul=False):
    """Pallas SelfAttention.forward.

    qry: (B, H, S_q, D) or (B, S_q, D); key/val match; attn_mask: (B, S_q, S_k)
    bool (or int, nonzero == keep) or None.  Returns (output, attn_weights);
    attn_weights is None when return_weights=False (flash path: no O(S^2) HBM
    writeback).

    Deviation: fully-masked query rows give uniform attention (mean of V)
    instead of torch's NaN row (finite -1e30 sentinel instead of -inf).
    """
    if qry.ndim == 3:  # module's 3-D case: use a size-1 head axis
        out, w = self_attention(qry[:, None], key[:, None], val[:, None],
                                attn_mask, return_weights=return_weights,
                                q_tile=q_tile, k_tile=k_tile,
                                head_tile=head_tile,
                                prefer_bf16_matmul=prefer_bf16_matmul)
        return out[:, 0], (None if w is None else w[:, 0])

    B, H, S_q, D = qry.shape
    S_k = key.shape[-2]
    use_mask = attn_mask is not None

    tq = q_tile if q_tile is not None else _pick_q_tile(S_q)
    assert S_q % tq == 0, "q tile must divide S_q"

    esz = jnp.dtype(qry.dtype).itemsize
    vmem_limit = _vmem_limit_bytes()
    budget = vmem_limit // 2  # leave headroom for Mosaic internal scratch
    mm_dtype = (jnp.bfloat16
                if (prefer_bf16_matmul and qry.dtype == jnp.float32) else None)

    args = [qry, key, val]
    if use_mask:
        args.append(attn_mask)  # bool passed straight through: no extra HBM pass

    cparams = dict(vmem_limit_bytes=vmem_limit)

    if return_weights:
        # Per-head per-step VMEM: double-buffered q/k/v/out/weights blocks plus
        # f32 score temporaries (s, e, w).
        per_head = (2 * esz * (tq * D + 2 * S_k * D + tq * D + tq * S_k)
                    + 3 * 4 * tq * S_k)
        th = head_tile if head_tile is not None else _pick_head_tile(H, per_head, budget)
        assert H % th == 0, "head tile must divide H"

        grid = (B, H // th, S_q // tq)
        in_specs = [
            pl.BlockSpec((None, th, tq, D), lambda b, h, qi: (b, h, qi, 0)),    # q
            pl.BlockSpec((None, th, S_k, D), lambda b, h, qi: (b, h, 0, 0)),    # k
            pl.BlockSpec((None, th, S_k, D), lambda b, h, qi: (b, h, 0, 0)),    # v
        ]
        if use_mask:
            in_specs.append(
                pl.BlockSpec((None, tq, S_k), lambda b, h, qi: (b, qi, 0)))     # mask
        out, weights = pl.pallas_call(
            _make_attn_kernel(use_mask, mm_dtype),
            out_shape=(
                jax.ShapeDtypeStruct((B, H, S_q, D), qry.dtype),
                jax.ShapeDtypeStruct((B, H, S_q, S_k), qry.dtype),
            ),
            grid_spec=pltpu.PrefetchScalarGridSpec(
                num_scalar_prefetch=0,
                grid=grid,
                in_specs=in_specs,
                out_specs=(
                    pl.BlockSpec((None, th, tq, D), lambda b, h, qi: (b, h, qi, 0)),
                    pl.BlockSpec((None, th, tq, S_k), lambda b, h, qi: (b, h, qi, 0)),
                ),
            ),
            compiler_params=pltpu.CompilerParams(
                dimension_semantics=("parallel", "parallel", "parallel"),
                **cparams),
        )(*args)
        return out, weights

    # Flash path: tile S_k too, online softmax, no weights output.
    tk = k_tile if k_tile is not None else _pick_k_tile(S_k)
    assert S_k % tk == 0, "k tile must divide S_k"

    per_head = (2 * esz * (tq * D + 2 * tk * D + tq * D)   # pipelined blocks
                + esz * tq * D                             # scaled-q scratch
                + 4 * (tq * D + 2 * tq)                    # acc / m / l scratch
                + 3 * 4 * tq * tk)                         # f32 s / p temporaries
    th = head_tile if head_tile is not None else _pick_head_tile(H, per_head, budget)
    assert H % th == 0, "head tile must divide H"

    grid = (B, H // th, S_q // tq, S_k // tk)
    in_specs = [
        pl.BlockSpec((None, th, tq, D), lambda b, h, qi, ki: (b, h, qi, 0)),    # q
        pl.BlockSpec((None, th, tk, D), lambda b, h, qi, ki: (b, h, ki, 0)),    # k
        pl.BlockSpec((None, th, tk, D), lambda b, h, qi, ki: (b, h, ki, 0)),    # v
    ]
    if use_mask:
        in_specs.append(
            pl.BlockSpec((None, tq, tk), lambda b, h, qi, ki: (b, qi, ki)))     # mask
    out = pl.pallas_call(
        _make_flash_kernel(use_mask, mm_dtype),
        out_shape=jax.ShapeDtypeStruct((B, H, S_q, D), qry.dtype),
        grid_spec=pltpu.PrefetchScalarGridSpec(
            num_scalar_prefetch=0,
            grid=grid,
            in_specs=in_specs,
            out_specs=pl.BlockSpec((None, th, tq, D),
                                   lambda b, h, qi, ki: (b, h, qi, 0)),
            scratch_shapes=[
                pltpu.VMEM((th, tq, D), qry.dtype),     # scaled q (hoisted)
                pltpu.VMEM((th, tq, 1), jnp.float32),   # running max
                pltpu.VMEM((th, tq, 1), jnp.float32),   # running denom
                pltpu.VMEM((th, tq, D), jnp.float32),   # output accumulator
            ],
        ),
        compiler_params=pltpu.CompilerParams(
            dimension_semantics=("parallel", "parallel", "parallel", "arbitrary"),
            **cparams),
    )(*args)
    return out, None


# ----------------------------------------------------------------------------
# Pure-JAX reference (mirrors the PyTorch module; HIGHEST-precision matmuls)
# ----------------------------------------------------------------------------
def _reference(qry, key, val, attn_mask=None):
    d_k = key.shape[-1]
    hp = jax.lax.Precision.HIGHEST
    scores = jnp.matmul(qry, jnp.swapaxes(key, -2, -1), precision=hp) / math.sqrt(d_k)
    if attn_mask is not None:
        bias = jnp.where(attn_mask, 0.0, -jnp.inf).astype(scores.dtype)
        scores = scores + bias[:, None, :, :]
    w = jax.nn.softmax(scores, axis=-1)
    return jnp.matmul(w, val, precision=hp), w


if __name__ == "__main__":
    # Tolerance covers MXU f32 matmul pass rounding (kernel and/or XLA side).
    TOL = dict(atol=2e-2, rtol=2e-2)

    # --- Small-shape test, full module semantics (output + weights) ---------
    B, H, S_q, S_k, D = 2, 4, 8, 8, 32
    key0 = jax.random.PRNGKey(0)
    kq, kk, kv, km = jax.random.split(key0, 4)
    qry = jax.random.normal(kq, (B, H, S_q, D), dtype=jnp.float32)
    key = jax.random.normal(kk, (B, H, S_k, D), dtype=jnp.float32)
    val = jax.random.normal(kv, (B, H, S_k, D), dtype=jnp.float32)
    attn_mask = jax.random.bernoulli(km, 0.8, (B, S_q, S_k))
    attn_mask = attn_mask.at[:, :, 0].set(True)  # no fully-masked rows

    ref_out, ref_w = _reference(qry, key, val, attn_mask)
    out, weights = self_attention(qry, key, val, attn_mask, return_weights=True)
    jax.block_until_ready((out, weights))
    assert out.shape == ref_out.shape and weights.shape == ref_w.shape
    assert jnp.allclose(out, ref_out, **TOL), "masked output mismatch"
    assert jnp.allclose(weights, ref_w, **TOL), "masked weights mismatch"

    # No-mask variant.
    ref_out_nm, ref_w_nm = _reference(qry, key, val, None)
    out_nm, w_nm = self_attention(qry, key, val, None, return_weights=True)
    jax.block_until_ready((out_nm, w_nm))
    assert jnp.allclose(out_nm, ref_out_nm, **TOL), "unmasked output mismatch"
    assert jnp.allclose(w_nm, ref_w_nm, **TOL), "unmasked weights mismatch"

    # --- Flash path (output only), exercising head / q / k tiling -----------
    B2, H2, S2, D2 = 1, 2, 256, 64
    kq2, kk2, kv2, km2 = jax.random.split(jax.random.PRNGKey(0), 4)
    qry2 = jax.random.normal(kq2, (B2, H2, S2, D2), dtype=jnp.float32)
    key2 = jax.random.normal(kk2, (B2, H2, S2, D2), dtype=jnp.float32)
    val2 = jax.random.normal(kv2, (B2, H2, S2, D2), dtype=jnp.float32)
    mask2 = jax.random.bernoulli(km2, 0.9, (B2, S2, S2)).at[:, :, 0].set(True)

    ref_out2, _ = _reference(qry2, key2, val2, mask2)
    out2, w2 = self_attention(qry2, key2, val2, mask2, return_weights=False,
                              q_tile=128, k_tile=128, head_tile=1)
    jax.block_until_ready(out2)
    assert w2 is None
    assert jnp.allclose(out2, ref_out2, **TOL), "flash output mismatch"

    print("KERNEL_OK")
</pallas_src>

<mosaic_0001>
module attributes {stable_mosaic.version = 11 : i64} {
  func.func @kernel(%arg0: i32, %arg1: i32, %arg2: i32, %arg3: memref<1x4x8x32xf32, #tpu.memory_space<vmem>>, %arg4: memref<1x4x8x32xf32, #tpu.memory_space<vmem>>, %arg5: memref<1x4x8x32xf32, #tpu.memory_space<vmem>>, %arg6: memref<1x8x8xi32, #tpu.memory_space<vmem>>, %arg7: memref<1x4x8x32xf32, #tpu.memory_space<vmem>>, %arg8: memref<1x4x8x8xf32, #tpu.memory_space<vmem>>) attributes {dimension_semantics = [#tpu.dimension_semantics<parallel>, #tpu.dimension_semantics<parallel>, #tpu.dimension_semantics<parallel>], iteration_bounds = array<i64: 2, 1, 1>, scalar_prefetch = 0 : i64, scratch_operands = 0 : i64, tpu.core_type = #tpu.core_type<tc>, window_params = [{transform_indices = @transform_0, window_bounds = array<i64: 1, 4, 8, 32>}, {transform_indices = @transform_1, window_bounds = array<i64: 1, 4, 8, 32>}, {transform_indices = @transform_2, window_bounds = array<i64: 1, 4, 8, 32>}, {transform_indices = @transform_3, window_bounds = array<i64: 1, 8, 8>}, {transform_indices = @transform_4, window_bounds = array<i64: 1, 4, 8, 32>}, {transform_indices = @transform_5, window_bounds = array<i64: 1, 4, 8, 8>}]} {
    %c0 = arith.constant 0 : index
    %c0_0 = arith.constant 0 : index
    %c0_1 = arith.constant 0 : index
    %c0_2 = arith.constant 0 : index
    %0 = vector.load %arg3[%c0, %c0_0, %c0_1, %c0_2] : memref<1x4x8x32xf32, #tpu.memory_space<vmem>>, vector<1x4x8x32xf32>
    %1 = vector.shape_cast %0 : vector<1x4x8x32xf32> to vector<4x8x32xf32>
    %c0_3 = arith.constant 0 : index
    %c0_4 = arith.constant 0 : index
    %c0_5 = arith.constant 0 : index
    %c0_6 = arith.constant 0 : index
    %2 = vector.load %arg4[%c0_3, %c0_4, %c0_5, %c0_6] : memref<1x4x8x32xf32, #tpu.memory_space<vmem>>, vector<1x4x8x32xf32>
    %3 = vector.shape_cast %2 : vector<1x4x8x32xf32> to vector<4x8x32xf32>
    %c0_7 = arith.constant 0 : index
    %c0_8 = arith.constant 0 : index
    %c0_9 = arith.constant 0 : index
    %c0_10 = arith.constant 0 : index
    %4 = vector.load %arg5[%c0_7, %c0_8, %c0_9, %c0_10] : memref<1x4x8x32xf32, #tpu.memory_space<vmem>>, vector<1x4x8x32xf32>
    %5 = vector.shape_cast %4 : vector<1x4x8x32xf32> to vector<4x8x32xf32>
    %cst = arith.constant 0.176776692 : f32
    %6 = vector.broadcast %cst : f32 to vector<4x8x32xf32>
    %7 = arith.mulf %1, %6 : vector<4x8x32xf32>
    %cst_11 = arith.constant dense<0.000000e+00> : vector<4x8x8xf32>
    %8 = tpu.matmul %7, %3, %cst_11 {dimension_numbers = #tpu.dot_dimension_numbers<[2], [2], [1], [1], [0, 0, 0, 1, 1, 1], [0], [0]>} : vector<4x8x32xf32>, vector<4x8x32xf32>, vector<4x8x8xf32> -> vector<4x8x8xf32>
    %c0_12 = arith.constant 0 : index
    %c0_13 = arith.constant 0 : index
    %c0_14 = arith.constant 0 : index
    %9 = vector.load %arg6[%c0_12, %c0_13, %c0_14] : memref<1x8x8xi32, #tpu.memory_space<vmem>>, vector<1x8x8xi32>
    %10 = vector.shape_cast %9 : vector<1x8x8xi32> to vector<8x8xi32>
    %cst_15 = arith.constant dense<0> : vector<8x8xi32>
    %11 = arith.cmpi ne, %10, %cst_15 : vector<8x8xi32>
    %12 = vector.shape_cast %11 : vector<8x8xi1> to vector<1x8x8xi1>
    %cst_16 = arith.constant -1.000000e+30 : f32
    %13 = vector.shape_cast %12 : vector<1x8x8xi1> to vector<1x8x8xi1>
    %14 = vector.broadcast %13 : vector<1x8x8xi1> to vector<4x8x8xi1>
    %15 = vector.broadcast %cst_16 : f32 to vector<4x8x8xf32>
    %16 = arith.select %14, %8, %15 : vector<4x8x8xi1>, vector<4x8x8xf32>
    %cst_17 = arith.constant dense<0xFF800000> : vector<4x8xf32>
    %17 = vector.multi_reduction <maximumf>, %16, %cst_17 [2] : vector<4x8x8xf32> to vector<4x8xf32>
    %18 = vector.shape_cast %17 : vector<4x8xf32> to vector<4x8x1xf32>
    %19 = vector.broadcast %18 : vector<4x8x1xf32> to vector<4x8x8xf32>
    %20 = arith.subf %16, %19 : vector<4x8x8xf32>
    %21 = math.exp %20 : vector<4x8x8xf32>
    %cst_18 = arith.constant dense<0.000000e+00> : vector<4x8xf32>
    %22 = vector.multi_reduction <add>, %21, %cst_18 [2] : vector<4x8x8xf32> to vector<4x8xf32>
    %23 = vector.shape_cast %22 : vector<4x8xf32> to vector<4x8x1xf32>
    %cst_19 = arith.constant 1.000000e+00 : f32
    %24 = vector.broadcast %cst_19 : f32 to vector<4x8x1xf32>
    %25 = arith.divf %24, %23 : vector<4x8x1xf32>
    %26 = vector.broadcast %25 : vector<4x8x1xf32> to vector<4x8x8xf32>
    %27 = arith.mulf %21, %26 : vector<4x8x8xf32>
    %cst_20 = arith.constant dense<0.000000e+00> : vector<4x8x32xf32>
    %28 = tpu.matmul %27, %5, %cst_20 {dimension_numbers = #tpu.dot_dimension_numbers<[2], [1], [1], [2], [0, 0, 0, 1, 1, 2], [0], [0]>} : vector<4x8x8xf32>, vector<4x8x32xf32>, vector<4x8x32xf32> -> vector<4x8x32xf32>
    %c0_21 = arith.constant 0 : index
    %c0_22 = arith.constant 0 : index
    %c0_23 = arith.constant 0 : index
    %c0_24 = arith.constant 0 : index
    %29 = vector.load %arg8[%c0_21, %c0_22, %c0_23, %c0_24] : memref<1x4x8x8xf32, #tpu.memory_space<vmem>>, vector<1x4x8x8xf32>
    %30 = vector.shape_cast %29 : vector<1x4x8x8xf32> to vector<4x8x8xf32>
    %31 = vector.shape_cast %27 : vector<4x8x8xf32> to vector<1x4x8x8xf32>
    tpu.vector_store %arg8[%c0_21, %c0_22, %c0_23, %c0_24], %31 {strides = array<i32>} : memref<1x4x8x8xf32, #tpu.memory_space<vmem>>, vector<1x4x8x8xf32>,
    %c0_25 = arith.constant 0 : index
    %c0_26 = arith.constant 0 : index
    %c0_27 = arith.constant 0 : index
    %c0_28 = arith.constant 0 : index
    %32 = vector.load %arg7[%c0_25, %c0_26, %c0_27, %c0_28] : memref<1x4x8x32xf32, #tpu.memory_space<vmem>>, vector<1x4x8x32xf32>
    %33 = vector.shape_cast %32 : vector<1x4x8x32xf32> to vector<4x8x32xf32>
    %34 = vector.shape_cast %28 : vector<4x8x32xf32> to vector<1x4x8x32xf32>
    tpu.vector_store %arg7[%c0_25, %c0_26, %c0_27, %c0_28], %34 {strides = array<i32>} : memref<1x4x8x32xf32, #tpu.memory_space<vmem>>, vector<1x4x8x32xf32>,
    return
  }
  func.func @transform_0(%arg0: i32, %arg1: i32, %arg2: i32) -> (i32, i32, i32, i32) {
    %c0_i32 = arith.constant 0 : i32
    %c0_i32_0 = arith.constant 0 : i32
    return %arg0, %arg1, %arg2, %c0_i32 : i32, i32, i32, i32
  }
  func.func @transform_1(%arg0: i32, %arg1: i32, %arg2: i32) -> (i32, i32, i32, i32) {
    %c0_i32 = arith.constant 0 : i32
    %c0_i32_0 = arith.constant 0 : i32
    %c0_i32_1 = arith.constant 0 : i32
    return %arg0, %arg1, %c0_i32, %c0_i32_0 : i32, i32, i32, i32
  }
  func.func @transform_2(%arg0: i32, %arg1: i32, %arg2: i32) -> (i32, i32, i32, i32) {
    %c0_i32 = arith.constant 0 : i32
    %c0_i32_0 = arith.constant 0 : i32
    %c0_i32_1 = arith.constant 0 : i32
    return %arg0, %arg1, %c0_i32, %c0_i32_0 : i32, i32, i32, i32
  }
  func.func @transform_3(%arg0: i32, %arg1: i32, %arg2: i32) -> (i32, i32, i32) {
    %c0_i32 = arith.constant 0 : i32
    %c0_i32_0 = arith.constant 0 : i32
    return %arg0, %arg2, %c0_i32 : i32, i32, i32
  }
  func.func @transform_4(%arg0: i32, %arg1: i32, %arg2: i32) -> (i32, i32, i32, i32) {
    %c0_i32 = arith.constant 0 : i32
    %c0_i32_0 = arith.constant 0 : i32
    return %arg0, %arg1, %arg2, %c0_i32 : i32, i32, i32, i32
  }
  func.func @transform_5(%arg0: i32, %arg1: i32, %arg2: i32) -> (i32, i32, i32, i32) {
    %c0_i32 = arith.constant 0 : i32
    %c0_i32_0 = arith.constant 0 : i32
    return %arg0, %arg1, %arg2, %c0_i32 : i32, i32, i32, i32
  }
}

</mosaic_0001>

<bundles_post_ra>
// kernel: tpu_custom_call.1
= control target key start
LH: loop header
LB: loop body
LE: loop exit
PB: predicated region body
PF: predicated region fallthrough
CT: control target
= control target key end

     0   :  { %s2260_s0 = inlined_call_operand.hbm [shape: f32[2,4,8,32], index: 0, kind: input, shape index: {}]   ;;  %s2261_s1 = inlined_call_operand.hbm [shape: f32[2,4,8,32], index: 1, kind: input, shape index: {}]   ;;  %s2262_s2 = inlined_call_operand.hbm [shape: f32[2,4,8,32], index: 2, kind: input, shape index: {}]   ;;  %s2263_s3 = inlined_call_operand.hbm [shape: s32[2,8,8], index: 3, kind: input, shape index: {}]   ;;  %s2264_s4 = inlined_call_operand.hbm [shape: f32[2,4,8,32], index: 4, kind: output, shape index: {0}]   ;;  %s2265_s5 = inlined_call_operand.hbm [shape: f32[2,4,8,8], index: 5, kind: output, shape index: {1}]  }
   0x1   :  { %2279 = sst [smem:[#allocation24_spill]] %s2260_s0 }
   0x2   :  { %2280 = sst [smem:[#allocation25_spill]] %s2261_s1 }
   0x3   :  { %11 = vsyncpa [#allocation3], 0 }
   0x4   :  { %13 = vsyncpa [#allocation3 + $0x1], 0 }
   0x5   :  { %14 = vsyncpa [#allocation6], 0 }
   0x6   :  { %16 = vsyncpa [#allocation6 + $0x1], 0 }
   0x7   :  { %17 = vsyncpa [#allocation9], 0 }
   0x8   :  { %19 = vsyncpa [#allocation9 + $0x1], 0 }
   0x9   :  { %20 = vsyncpa [#allocation4], 0 }
   0xa   :  { %22 = vsyncpa [#allocation4 + $0x1], 0 }
   0xb   :  { %23 = vsyncpa [#allocation12], 0 }
   0xc   :  { %25 = vsyncpa [#allocation12 + $0x1], 0  ;;  %s1831_s18 = smov 0   ;;  %s1833_s19 = smov 0  }
   0xd   :  { %s1835_s20 = smov 0   ;;  %s1837_s21 = smov 0  }
   0xe   :  { %s1839_s22 = smov 0   ;;  %s1841_s23 = smov 0  }
   0xf LB: > { %2281 = sst [smem:[#allocation18_spill]] %s1767_s18  ;;  %s1862_s24 = sadd.s32 4294967295, %s1787_s23   ;;  %s1787_s23 = sphi %s1841_s23, %s31_s23   ;;  %s1783_s22 = sphi %s1839_s22, %s2315_s22   ;;  %s1779_s21 = sphi %s1837_s21, %s2314_s21   ;;  %s1775_s20 = sphi %s1835_s20, %s2310_s20   ;;  %s1771_s19 = sphi %s1833_s19, %s2313_s19   ;;  %s1767_s18 = sphi %s1831_s18, %s2312_s18  }
  0x10   : > { %2282 = sst [smem:[#allocation19_spill]] %s1775_s20  ;;  %s1339_s25 = sadd.s32 4294967294, %s1787_s23  }
  0x11   : > { %2283 = sst [smem:[#allocation20_spill]] %s1787_s23  ;;  %s50_s26 = sadd.s32 1, %s1783_s22 }
  0x12   : > { %s61_s27 = sadd.s32 1, %s1775_s20  ;;  %p52_p0 = scmp.ge.s32.totalorder %s50_s26, 2 }
  0x13   : > { %p68_p1 = scmp.ne.s32.totalorder %s1775_s20, %s1771_s19  ;;  %p69_p2 = scmp.eq.s32.totalorder %s1787_s23, 0 }
  0x14   : > { %p74_p3 = scmp.ne.s32.totalorder %s1771_s19, %s1767_s18  ;;  %s2317_s26 = smov (%p52_p0, %s50_s26), 0 }
  0x15   : > { %2284 = sst [smem:[#allocation21_spill]] %s2317_s26  ;;  %p1874_p4 = por %p69_p2, %p68_p1 }
  0x16   : > { %p75_p5 = scmp.eq.s32.totalorder %s1862_s24, 0  ;;  %s54_s29 = ssub.s32 %s1783_s22, %s2317_s26 }
  0x17   : > { %p186_p6 = scmp.eq.s32.totalorder %s1862_s24, 1  ;;  %p59_p7 = scmp.eq.s32.totalorder %s54_s29, 0 }
  0x18   : > { %p1882_p8 = por %p75_p5, %p74_p3  ;;  %p192_p10 = scmp.eq.s32.totalorder %s1339_s25, 1 }
  0x19   : > { %p1886_p9 = por %p186_p6, %p68_p1  ;;  %p1473_p13 = scmp.lt.s32.totalorder %s1787_s23, 2 }
  0x1a   : > { %s2286_s30 = scalar_select %p1882_p8, 1, 0 }
  0x1b   : > { %s2287_s6 = scalar_select %p1886_p9, 1, 0 }
  0x1c   : > { %s1891_s7 = scalar_select %p59_p7, %s1775_s20, %s61_s27  }
  0x1d   : > { %p1893_p11 = por %p192_p10, %p74_p3  ;;  %s1900_s9 = sand.u32 1, %s1775_s20  }
  0x1e   : > { %2288 = sst [smem:[#allocation22_spill]] %s1891_s7  ;;  %s1903_s10 = sshll.u32 %s1900_s9, 5 }
  0x1f   : > { %s2289_s8 = scalar_select %p1893_p11, 1, 0 }
  0x20   : > { %s1906_s11 = sshll.u32 %s1783_s22, 9  ;;  %p1910_p0 = pnand %p1473_p13, %p1874_p4 }
  0x21   : > { %2290 = sst [smem:[#allocation23_spill]] %s2289_s8  ;;  %s266_s13 = sand.u32 1, %s1787_s23  }
  0x22   : > { %s2291_s12 = scalar_select %p1910_p0, 1, 0 }
  0x23   : > { %s2292_s1 = sld [smem:[#allocation25_spill]]  ;;  %s270_s17 = scalar_lea.vmem [#allocation5], %s1903_s10 }
  0x24   : > { %s279_s25 = sshll.u32 %s270_s17, 4  ;;  %s1926_s27 = scalar_lea.sflag [#allocation6], %s266_s13  ;;  %s1923_s25 = int_to_ptr.vmem [resolvable:$true] %s279_s25 }
  0x25   : > { %p1932_p4 = pneg %p1910_p0 }
  0x29   : > { %s1919_s16 = scalar_lea.hbm %s2292_s1, %s1906_s11  ;;  %s1550_s17 = scalar_lea.hbm %s2292_s1, 1024 }
  0x2a   : > { %s1545_s28 = scalar_lea.hbm %s1919_s16, 512  ;;  %p1551_p7 = scmp.lt.u32.totalorder %s1919_s16, %s2292_s1 }
  0x2b   : > { %p1546_p3 = scmp.ne.s32.totalorder %s1919_s16, %s1545_s28  ;;  %p1552_p10 = scmp.lt.u32.totalorder %s1550_s17, %s1545_s28 }
  0x2c   : > { %p1554_p12 = scmp.lt.u32.totalorder %s1545_s28, %s1919_s16 }
  0x2d   : > { %p1548_p5 = pnand %p1932_p4, %p1546_p3  ;;  %p1553_p13 = por %p1552_p10, %p1551_p7 }
  0x2f   : > { %p1549_p6 = pneg %p1548_p5  ;;  %p1555_p1 = por %p1554_p12, %p1553_p13 }
  0x31   : > { %p1556_p2 = pnand %p1555_p1, %p1549_p6 }
  0x33   : > { %1559 = shalt.err (!%p1556_p2)
}
  0x34   : > { %s1560_s13 = scalar_lea.vmem %s1923_s25, 512  ;;  %s1789_s14 = smov [#allocation5]  }
  0x35   : > { %p1561_p3 = scmp.ne.s32.totalorder %s1923_s25, %s1560_s13  ;;  %s1565_s15 = sshll.u32 %s1789_s14, 4  ;;  %s1566_s15 = int_to_ptr.vmem [resolvable:$false] %s1565_s15 }
  0x36   : > { %s1567_s26 = scalar_lea.vmem %s1566_s15, 1024  ;;  %p1568_p9 = scmp.lt.s32.totalorder %s1923_s25, %s1566_s15 }
  0x37   : > { %p1563_p5 = pnand %p1561_p3, %p1932_p4  ;;  %p1569_p8 = scmp.lt.s32.totalorder %s1567_s26, %s1560_s13 }
  0x39   : > { %p1564_p11 = pneg %p1563_p5  ;;  %p1570_p7 = por %p1569_p8, %p1568_p9 }
  0x3b   : > { %p1571_p10 = pnand %p1570_p7, %p1564_p11 }
  0x3d   : > { %1574 = shalt.err (!%p1571_p10)
}
  0x3e   : > { %s2269_s7 = smov 128   ;;  %s2271_s28 = smov 8  }
  0x3f   : > { %1459 = dma.hbm_to_vmem [thread:$0]  (!%p1910_p0), %s1919_s16, 512, %s1923_s25, %s1926_s27, %s2269_s7, %s2269_s7, %s2271_s28  }
  0x40   : > { %p2294_p8 = scmp.lt.s32.totalorder %s1787_s23, 3  ;;  %p2295_p9 = scmp.ge.s32.totalorder %s1787_s23, 1 }
  0x41   : > { %s2297_s0 = sld [smem:[#allocation24_spill]]  ;;  %s246_s26 = scalar_lea.vmem [#allocation2], %s1903_s10 }
  0x42   : > { %p1963_p11 = pnand %p2295_p9, %p2294_p8  ;;  %s256_s1 = sshll.u32 %s246_s26, 4  ;;  %s1974_s1 = int_to_ptr.vmem [resolvable:$true] %s256_s1 }
  0x43   : > { %s1980_s7 = scalar_lea.hbm %s2262_s2, %s1906_s11  ;;  %s243_s28 = scalar_lea.sflag [#allocation3], %s1900_s9 }
  0x44   : > { %s2296_s17 = scalar_select %p1963_p11, 1, 0 }
  0x47   : > { %s1971_s15 = scalar_lea.hbm %s2297_s0, %s1906_s11  ;;  %s1580_s23 = scalar_lea.hbm %s2297_s0, 1024 }
  0x48   : > { %s1575_s20 = scalar_lea.hbm %s1971_s15, 512  ;;  %p1581_p6 = scmp.lt.u32.totalorder %s1971_s15, %s2297_s0 }
  0x49   : > { %p1576_p12 = scmp.ne.s32.totalorder %s1971_s15, %s1575_s20  ;;  %p1582_p13 = scmp.lt.u32.totalorder %s1580_s23, %s1575_s20 }
  0x4a   : > { %p1584_p5 = scmp.lt.u32.totalorder %s1575_s20, %s1971_s15 }
  0x4b   : > { %p1578_p1 = pnand %p1576_p12, %p1932_p4  ;;  %p1583_p3 = por %p1582_p13, %p1581_p6 }
  0x4d   : > { %p1579_p2 = pneg %p1578_p1  ;;  %p1585_p7 = por %p1584_p5, %p1583_p3 }
  0x4f   : > { %p1586_p10 = pnand %p1585_p7, %p1579_p2 }
  0x51   : > { %1589 = shalt.err (!%p1586_p10)
}
  0x52   : > { %s1590_s11 = scalar_lea.vmem %s1974_s1, 512  ;;  %s1792_s26 = smov [#allocation2]  }
  0x53   : > { %p1591_p8 = scmp.ne.s32.totalorder %s1974_s1, %s1590_s11  ;;  %s1595_s16 = sshll.u32 %s1792_s26, 4  ;;  %s1596_s16 = int_to_ptr.vmem [resolvable:$false] %s1595_s16 }
  0x54   : > { %s1597_s18 = scalar_lea.vmem %s1596_s16, 1024  ;;  %p1598_p1 = scmp.lt.s32.totalorder %s1974_s1, %s1596_s16 }
  0x55   : > { %p1593_p9 = pnand %p1591_p8, %p1932_p4  ;;  %p1599_p11 = scmp.lt.s32.totalorder %s1597_s18, %s1590_s11 }
  0x57   : > { %p1594_p12 = pneg %p1593_p9  ;;  %p1600_p6 = por %p1599_p11, %p1598_p1 }
  0x59   : > { %p1601_p13 = pnand %p1600_p6, %p1594_p12 }
  0x5b   : > { %1604 = shalt.err (!%p1601_p13)
}
  0x5c   : > { %s2298_s20 = smov 8   ;;  %s2299_s23 = smov 128  }
  0x5d   : > { %1456 = dma.hbm_to_vmem [thread:$0]  (!%p1910_p0), %s1971_s15, 512, %s1974_s1, %s243_s28, %s2299_s23, %s2299_s23, %s2298_s20  }
  0x5e   : > { %s293_s8 = scalar_lea.vmem [#allocation7], %s1903_s10  ;;  %s1351_s13 = sshll.u32 %s1900_s9, 3 }
  0x5f   : > { %s302_s25 = sshll.u32 %s293_s8, 4  ;;  %s1605_s14 = scalar_lea.hbm %s1980_s7, 512  ;;  %s2010_s25 = int_to_ptr.vmem [resolvable:$true] %s302_s25 }
  0x60   : > { %p1606_p11 = scmp.ne.s32.totalorder %s1980_s7, %s1605_s14  ;;  %s1610_s16 = scalar_lea.hbm %s2262_s2, 1024 }
  0x61   : > { %p1611_p5 = scmp.lt.u32.totalorder %s1980_s7, %s2262_s2  ;;  %p1612_p7 = scmp.lt.u32.totalorder %s1610_s16, %s1605_s14 }
  0x62   : > { %p1608_p2 = pnand %p1606_p11, %p1932_p4  ;;  %p1614_p8 = scmp.lt.u32.totalorder %s1605_s14, %s1980_s7 }
  0x63   : > { %p1613_p10 = por %p1612_p7, %p1611_p5 }
  0x64   : > { %p1609_p3 = pneg %p1608_p2 }
  0x65   : > { %p1615_p9 = por %p1614_p8, %p1613_p10 }
  0x67   : > { %p1616_p12 = pnand %p1615_p9, %p1609_p3 }
  0x69   : > { %1619 = shalt.err (!%p1616_p12)
}
  0x6a   : > { %s1620_s1 = scalar_lea.vmem %s2010_s25, 512  ;;  %s1793_s10 = smov [#allocation7]  }
  0x6b   : > { %p1621_p1 = scmp.ne.s32.totalorder %s2010_s25, %s1620_s1  ;;  %s1625_s28 = sshll.u32 %s1793_s10, 4  ;;  %s1626_s28 = int_to_ptr.vmem [resolvable:$false] %s1625_s28 }
  0x6c   : > { %s1627_s0 = scalar_lea.vmem %s1626_s28, 1024  ;;  %p1628_p11 = scmp.lt.s32.totalorder %s2010_s25, %s1626_s28 }
  0x6d   : > { %p1623_p6 = pnand %p1621_p1, %p1932_p4  ;;  %p1629_p2 = scmp.lt.s32.totalorder %s1627_s0, %s1620_s1 }
  0x6f   : > { %p1624_p13 = pneg %p1623_p6  ;;  %p1630_p5 = por %p1629_p2, %p1628_p11 }
  0x71   : > { %p1631_p7 = pnand %p1630_p5, %p1624_p13 }
  0x73   : > { %1634 = shalt.err (!%p1631_p7)
}
  0x74   : > { %1462 = dma.hbm_to_vmem [thread:$0]  (!%p1910_p0), %s1980_s7, 512, %s2010_s25, %s1926_s27, %s2299_s23, %s2299_s23, %s2298_s20  }
  0x75   : > { %s1352_s15 = sshll.u32 %s1783_s22, 7  ;;  %s316_s26 = scalar_lea.vmem [#allocation8], %s1351_s13 }
  0x76   : > { %s2042_s11 = scalar_lea.hbm %s2263_s3, %s1352_s15  ;;  %s324_s16 = sshll.u32 %s316_s26, 4  ;;  %s325_s16 = int_to_ptr.vmem [resolvable:$true] %s324_s16 }
  0x77   : > { %s313_s18 = scalar_lea.sflag [#allocation9], %s1900_s9  ;;  %s1635_s1 = scalar_lea.hbm %s2042_s11, 128 }
  0x78   : > { %p1636_p3 = scmp.ne.s32.totalorder %s2042_s11, %s1635_s1  ;;  %s1640_s20 = scalar_lea.hbm %s2263_s3, 256 }
  0x79   : > { %p1641_p9 = scmp.lt.u32.totalorder %s2042_s11, %s2263_s3  ;;  %p1642_p12 = scmp.lt.u32.totalorder %s1640_s20, %s1635_s1 }
  0x7a   : > { %p1638_p10 = pnand %p1636_p3, %p1932_p4  ;;  %p1644_p6 = scmp.lt.u32.totalorder %s1635_s1, %s2042_s11 }
  0x7b   : > { %p1643_p1 = por %p1642_p12, %p1641_p9 }
  0x7c   : > { %p1639_p8 = pneg %p1638_p10 }
  0x7d   : > { %p1645_p13 = por %p1644_p6, %p1643_p1 }
  0x7f   : > { %p1646_p11 = pnand %p1645_p13, %p1639_p8 }
  0x81   : > { %1649 = shalt.err (!%p1646_p11)
}
  0x82   : > { %s1650_s9 = scalar_lea.vmem %s325_s16, 128  ;;  %s1794_s13 = smov [#allocation8]  }
  0x83   : > { %p1651_p2 = scmp.ne.s32.totalorder %s325_s16, %s1650_s9  ;;  %s1655_s10 = sshll.u32 %s1794_s13, 4  ;;  %s1656_s10 = int_to_ptr.vmem [resolvable:$false] %s1655_s10 }
  0x84   : > { %s1657_s28 = scalar_lea.vmem %s1656_s10, 256  ;;  %p1658_p3 = scmp.lt.s32.totalorder %s325_s16, %s1656_s10 }
  0x85   : > { %p1653_p5 = pnand %p1651_p2, %p1932_p4  ;;  %p1659_p10 = scmp.lt.s32.totalorder %s1657_s28, %s1650_s9 }
  0x87   : > { %p1654_p7 = pneg %p1653_p5  ;;  %p1660_p0 = por %p1659_p10, %p1658_p3 }
  0x89   : > { %p1661_p9 = pnand %p1660_p0, %p1654_p7 }
  0x8b   : > { %1664 = shalt.err (!%p1661_p9)
}
  0x8c   : > { %p2300_p12 = scmp.ne.s32.totalorder %s2291_s12, 0  ;;  %p2301_p8 = scmp.ne.s32.totalorder %s2296_s17, 0 }
  0x8d   : > { %s2067_s29 = sand.u32 (!%p2301_p8), 1, %s1771_s19   ;;  %p2302_p0 = scmp.ne.s32.totalorder (!%p2301_p8), %s2286_s30, 0 }
  0x8e   : > { %1465 = dma.hbm_to_vmem [thread:$0]  (!%p2300_p12), %s2042_s11, 128, %s325_s16, %s313_s18  }
  0x8f   : > { %333 = sbr.rel (%p2301_p8) target bundleno = 924 (0x39c), region = 36  ;;  %s2070_s0 = sshll.u32 (!%p2301_p8), %s2067_s29, 5 }
  0x90   : > { %s336_s15 = scalar_lea.sflag (!%p2301_p8), [#allocation3], %s2067_s29  ;;  %s2074_s8 = scalar_lea.vmem (!%p2301_p8), [#allocation2], %s2070_s0 }
  0x96   : > { %1746 = dma.done.wait (%p2302_p0), %s336_s15, 512  }
  0x97   : > { %1748 = vsyncadd (%p2302_p0), %s336_s15, 4294966784  ;;  %s344_s12 = sand.u32 1, %s1862_s24   ;;  %s348_s14 = scalar_lea.vmem [#allocation5], %s2070_s0 }
  0x98   : > { %s345_s17 = scalar_lea.sflag [#allocation6], %s344_s12 }
  0x99   : > { %1750 = dma.done.wait (%p2302_p0), %s345_s17, 1024  }
  0x9a   : > { %1752 = vsyncadd (%p2302_p0), %s345_s17, 4294966272  ;;  %s1357_s11 = sshll.u32 %s2067_s29, 3  ;;  %s2088_s26 = scalar_lea.vmem [#allocation7], %s2070_s0 }
  0x9b   : > { %s363_s16 = scalar_lea.sflag [#allocation9], %s2067_s29  ;;  %s2091_s18 = scalar_lea.vmem [#allocation8], %s1357_s11 }
  0x9c   : > { %1754 = dma.done.wait (%p2302_p0), %s363_s16, 128  }
  0x9d   : > { %1756 = vsyncadd (%p2302_p0), %s363_s16, 4294967168  ;;  %v1795_v0 = vmov 0.0   ;;  %vm1796_vm0 = vmmov 0   ;;  %vm434_vm1 = vcmask 261120   ;;  %v422_v1 = vld [vmem:[%s348_s14] sm:$0xff]  ;;  %v423_v3 = vld [vmem:[%s348_s14 + $0x8] sm:$0xff] }
  0x9e   : > { %1401 = vmatprep.subr.mxu0 %v1795_v0  ;;  %1403 = vmatprep.mubr.msk.f32.mxu0 %vm1796_vm0, %v1795_v0  ;;  %v418_v2 = vld [vmem:[%s2074_s8] sm:$0xff]  ;;  %v419_v5 = vld [vmem:[%s2074_s8 + $0x8] sm:$0xff]  ;;  %v420_v6 = vld [vmem:[%s2074_s8 + $0x10] sm:$0xff]  ;;  %vm747_vm3 = vcmask 64512   ;;  %s412_s24 = scalar_lea.vmem [#allocation11], %s2070_s0  ;;  %s1383_s30 = sshll.u32 %s1779_s21, 9 }
  0x9f   : > { %1406 = vmatprep.subr.mxu1 %v1795_v0  ;;  %1408 = vmatprep.mubr.msk.f32.mxu1 %vm1796_vm0, %v1795_v0  ;;  %v430_v4 = vmul.f32 0.17677669, %v418_v2  ;;  %v424_v7 = vld [vmem:[%s348_s14 + $0x10] sm:$0xff]  ;;  %v431_v8 = vmul.f32 0.17677669, %v419_v5  ;;  %v421_v9 = vld [vmem:[%s2074_s8 + $0x18] sm:$0xff]  ;;  %s2165_s7 = scalar_lea.hbm %s2265_s5, %s1383_s30 }
  0xa0   : > { %1402 = vmatpush3.xpose.msk.msra.mxu0 %vm434_vm1, %v422_v1  ;;  %1407 = vmatpush3.xpose.msk.msra.mxu1 %vm434_vm1, %v423_v3  ;;  %v425_v10 = vld [vmem:[%s348_s14 + $0x18] sm:$0xff]  ;;  %v432_v11 = vmul.f32 0.17677669, %v420_v6  ;;  %v433_v12 = vmul.f32 0.17677669, %v421_v9  ;;  %v739_v13 = vld [vmem:[%s2091_s18] sm:$0xff] }
  0xa1   : > { %1411 = vmatprep.subr.mxu0 %v1795_v0  ;;  %1416 = vmatprep.subr.mxu1 %v1795_v0  ;;  %vm740_vm2 = vcmp.ne.s32.totalorder %v739_v13, 0  ;;  %v426_v50 = vld [vmem:[%s2088_s26] sm:$0xff]  ;;  %v427_v51 = vld [vmem:[%s2088_s26 + $0x8] sm:$0xff]  ;;  %v428_v58 = vld [vmem:[%s2088_s26 + $0x10] sm:$0xff]  ;;  %s1137_s20 = sshll.u32 %s412_s24, 4  ;;  %s1102_s23 = scalar_lea.sflag [#allocation12], %s2067_s29  ;;  %s2167_s20 = int_to_ptr.vmem [resolvable:$true] %s1137_s20 }
  0xa2   : > { %v429_v62 = vld [vmem:[%s2088_s26 + $0x18] sm:$0xff]  ;;  %s1665_s25 = scalar_lea.vmem %s2167_s20, 512  ;;  %p2303_p1 = scmp.ne.s32.totalorder %s2287_s6, 0 }
  0xa3   : > { %1404 = vmatmul.mubr.msk.f32.vlgmr.msra.gmra.mrb[0].mxu0 %vm434_vm1, %v430_v4  ;;  %1409 = vmatmul.mubr.msk.f32.vlgmr.msra.gmra.mrb[0].mxu1 %vm434_vm1, %v431_v8  ;;  %p1666_p4 = scmp.ne.s32.totalorder %s2167_s20, %s1665_s25  ;;  %s1797_s9 = smov [#allocation11]  }
  0xa4   : > { %1412 = vmatpush3.xpose.msk.msra.mxu0 %vm434_vm1, %v424_v7  ;;  %1413 = vmatprep.mubr.msk.f32.mxu0 %vm1796_vm0, %v1795_v0  ;;  %s1669_s13 = sshll.u32 %s1797_s9, 4  ;;  %s1670_s13 = int_to_ptr.vmem [resolvable:$false] %s1669_s13 }
  0xa5   : > { %1417 = vmatpush3.xpose.msk.msra.mxu1 %vm434_vm1, %v425_v10  ;;  %1418 = vmatprep.mubr.msk.f32.mxu1 %vm1796_vm0, %v1795_v0  ;;  %p1667_p6 = pnand %p1666_p4, %p2303_p1  ;;  %s1671_s10 = scalar_lea.vmem %s1670_s13, 1024 }
  0xa6   : > { %1421 = vmatprep.subr.mxu0 %v1795_v0  ;;  %1426 = vmatprep.subr.mxu1 %v1795_v0  ;;  %p1672_p11 = scmp.lt.s32.totalorder %s2167_s20, %s1670_s13  ;;  %p1673_p2 = scmp.lt.s32.totalorder %s1671_s10, %s1665_s25 }
  0xa7   : > { %1414 = vmatmul.mubr.msk.f32.vlgmr.msra.gmra.mrb[2].mxu0 %vm434_vm1, %v432_v11  ;;  %p1668_p13 = pneg %p1667_p6 }
  0xa8   : > { %1419 = vmatmul.mubr.msk.f32.vlgmr.msra.gmra.mrb[2].mxu1 %vm434_vm1, %v433_v12  ;;  %1423 = vmatprep.mubr.msk.f32.mxu0 %vm1796_vm0, %v1795_v0  ;;  %p1674_p5 = por %p1673_p2, %p1672_p11 }
  0xa9   : > { %1428 = vmatprep.mubr.msk.f32.mxu1 %vm1796_vm0, %v1795_v0  ;;  %1422 = vmatpush3.msra.mxu0 %v426_v50 }
  0xaa   : > { %1431 = vmatprep.subr.mxu0 %v1795_v0  ;;  %1427 = vmatpush3.msra.mxu1 %v427_v51  ;;  %p1675_p7 = pnand %p1674_p5, %p1668_p13 }
  0xab   : > { %1436 = vmatprep.subr.mxu1 %v1795_v0 }
 0x176   : > { %v507_v14 = vpop.f32.mrb[0].mxu0  ;;  %v583_v15 = vpop.f32.mrb[0].mxu1 }
 0x177   : > { %v743_v16 = vsel %vm740_vm2, %v507_v14, -1e+30  ;;  %v1405_v17 = vpop.f32.mrb[1].mxu0  ;;  %v744_v18 = vsel %vm740_vm2, %v583_v15, -1e+30  ;;  %v1410_v19 = vpop.f32.mrb[1].mxu1 }
 0x178   : > { %v748_v20 = vsel %vm747_vm3, %v743_v16, -inf  ;;  %v751_v22 = vsel %vm747_vm3, %v744_v18, -inf }
 0x179   : > { %749 = vmax.xlane.f32.xlu0 %v748_v20 }
 0x17a   : > { %v659_v21 = vpop.f32.mrb[2].mxu0 }
 0x17b   : > { %v745_v23 = vsel %vm740_vm2, %v659_v21, -1e+30  ;;  %v1415_v24 = vpop.f32.mrb[3].mxu0  ;;  %v735_v25 = vpop.f32.mrb[2].mxu1 }
 0x17c   : > { %v754_v26 = vsel %vm747_vm3, %v745_v23, -inf  ;;  %v746_v27 = vsel %vm740_vm2, %v735_v25, -1e+30  ;;  %v1420_v28 = vpop.f32.mrb[3].mxu1 }
 0x17d   : > { %752 = vmax.xlane.f32.xlu0 %v751_v22  ;;  %755 = vmax.xlane.f32.xlu1 %v754_v26  ;;  %v757_v29 = vsel %vm747_vm3, %v746_v27, -inf }
 0x181   : > { %758 = vmax.xlane.f32.xlu1 %v757_v29 }
 0x206   : > { %v750_v30 = vpop.xlane.xlu0 %749 }
 0x207   : > { %v760_v31 = vsub.f32 %v743_v16, %v750_v30 }
 0x209   : > { %v764_v32 = vmul.f32 1.442695, %v760_v31 }
 0x20a   : > { %v753_v33 = vpop.xlane.xlu0 %752  ;;  %v756_v34 = vpop.xlane.xlu1 %755 }
 0x20b   : > { %1529 = vpow2.f32 %v764_v32  ;;  %v761_v35 = vsub.f32 %v744_v18, %v753_v33  ;;  %v762_v36 = vsub.f32 %v745_v23, %v756_v34 }
 0x20d   : > { %v766_v37 = vmul.f32 1.442695, %v761_v35  ;;  %v768_v38 = vmul.f32 1.442695, %v762_v36 }
 0x20e   : > { %v759_v39 = vpop.xlane.xlu1 %758 }
 0x20f   : > { %1531 = vpow2.f32 %v766_v37  ;;  %v763_v40 = vsub.f32 %v746_v27, %v759_v39 }
 0x210   : > { %1533 = vpow2.f32 %v768_v38 }
 0x211   : > { %v770_v41 = vmul.f32 1.442695, %v763_v40 }
 0x213   : > { %1535 = vpow2.f32 %v770_v41 }
 0x215   : > { %v1530_v42 = vpop.eup %1529 }
 0x216   : > { %v772_v43 = vsel %vm747_vm3, %v1530_v42, 0.0 }
 0x217   : > { %773 = vadd.xlane.f32.xlu0 %v772_v43 }
 0x219   : > { %v1532_v44 = vpop.eup %1531 }
 0x21a   : > { %v1534_v45 = vpop.eup %1533  ;;  %v775_v46 = vsel %vm747_vm3, %v1532_v44, 0.0 }
 0x21b   : > { %776 = vadd.xlane.f32.xlu1 %v775_v46  ;;  %v778_v47 = vsel %vm747_vm3, %v1534_v45, 0.0 }
 0x21c   : > { %779 = vadd.xlane.f32.xlu0 %v778_v47 }
 0x21d   : > { %v1536_v48 = vpop.eup %1535 }
 0x21e   : > { %v781_v49 = vsel %vm747_vm3, %v1536_v48, 0.0 }
 0x21f   : > { %782 = vadd.xlane.f32.xlu1 %v781_v49 }
 0x2a4   : > { %v774_v52 = vpop.xlane.xlu0 %773 }
 0x2a5   : > { %1537 = vrcp.f32 %v774_v52 }
 0x2a8   : > { %v777_v53 = vpop.xlane.xlu1 %776 }
 0x2a9   : > { %v780_v54 = vpop.xlane.xlu0 %779  ;;  %1539 = vrcp.f32 %v777_v53 }
 0x2aa   : > { %1541 = vrcp.f32 %v780_v54 }
 0x2ac   : > { %v783_v55 = vpop.xlane.xlu1 %782 }
 0x2ad   : > { %1543 = vrcp.f32 %v783_v55 }
 0x2af   : > { %v1538_v56 = vpop.eup %1537 }
 0x2b0   : > { %v792_v57 = vmul.f32 %v1538_v56, %v1530_v42 }
 0x2b2   : > { %1088 = vst.msk [vmem:[%s412_s24] sm:$0xff] %vm747_vm3, %v792_v57  ;;  %1424 = vmatmul.mubr.msk.f32.vlgmr.msra.gmra.mrb[4].mxu0 %vm747_vm3, %v792_v57 }
 0x2b3   : > { %v1540_v59 = vpop.eup %1539  ;;  %1432 = vmatpush3.msra.mxu0 %v428_v58  ;;  %1433 = vmatprep.mubr.msk.f32.mxu0 %vm1796_vm0, %v1795_v0 }
 0x2b4   : > { %v1542_v60 = vpop.eup %1541  ;;  %v793_v61 = vmul.f32 %v1540_v59, %v1532_v44 }
 0x2b5   : > { %v794_v63 = vmul.f32 %v1542_v60, %v1534_v45 }
 0x2b6   : > { %1089 = vst.msk [vmem:[%s412_s24 + $0x8] sm:$0xff] %vm747_vm3, %v793_v61  ;;  %1429 = vmatmul.mubr.msk.f32.vlgmr.msra.gmra.mrb[4].mxu1 %vm747_vm3, %v793_v61 }
 0x2b7   : > { %v1544_v1 = vpop.eup %1543  ;;  %1090 = vst.msk [vmem:[%s412_s24 + $0x10] sm:$0xff] %vm747_vm3, %v794_v63  ;;  %1434 = vmatmul.mubr.msk.f32.vlgmr.msra.gmra.mrb[6].mxu0 %vm747_vm3, %v794_v63  ;;  %1437 = vmatpush3.msra.mxu1 %v429_v62 }
 0x2b8   : > { %v795_v2 = vmul.f32 %v1544_v1, %v1536_v48  ;;  %1438 = vmatprep.mubr.msk.f32.mxu1 %vm1796_vm0, %v1795_v0 }
 0x2ba   : > { %1091 = vst.msk [vmem:[%s412_s24 + $0x18] sm:$0xff] %vm747_vm3, %v795_v2  ;;  %1439 = vmatmul.mubr.msk.f32.vlgmr.msra.gmra.mrb[6].mxu1 %vm747_vm3, %v795_v2 }
 0x2bb   : > { %1678 = shalt.err (!%p1675_p7)
}
 0x2bc   : > { %s1679_s28 = scalar_lea.hbm %s2165_s7, 512  ;;  %s1683_s12 = scalar_lea.hbm %s2265_s5, 1024 }
 0x2bd   : > { %p1680_p3 = scmp.ne.s32.totalorder %s2165_s7, %s1679_s28  ;;  %p1684_p12 = scmp.lt.u32.totalorder %s2165_s7, %s2265_s5 }
 0x2be   : > { %p1685_p8 = scmp.lt.u32.totalorder %s1683_s12, %s1679_s28  ;;  %p1687_p4 = scmp.lt.u32.totalorder %s1679_s28, %s2165_s7 }
 0x2bf   : > { %p1681_p10 = pnand %p1680_p3, %p2303_p1 }
 0x2c0   : > { %p1686_p0 = por %p1685_p8, %p1684_p12 }
 0x2c1   : > { %p1682_p9 = pneg %p1681_p10 }
 0x2c2   : > { %p1688_p6 = por %p1687_p4, %p1686_p0 }
 0x2c4   : > { %p1689_p13 = pnand %p1688_p6, %p1682_p9 }
 0x2c6   : > { %1692 = shalt.err (!%p1689_p13)
}
 0x2c7   : > { %s1798_s11 = smov 128   ;;  %s1799_s26 = smov 8  }
 0x2c8   : > { %1450 = dma.vmem_to_hbm [thread:$0]  (%p2303_p1), %s2167_s20, 512, %s2165_s7, %s1102_s23, %s1798_s11, %s1798_s11, %s1799_s26  }
 0x2c9   : > { %s405_s16 = scalar_lea.vmem [#allocation10], %s2070_s0  ;;  %s2207_s1 = scalar_lea.hbm %s2264_s4, %s1383_s30 }
 0x2ca   : > { %s1118_s18 = sshll.u32 %s405_s16, 4  ;;  %s1097_s27 = scalar_lea.sflag [#allocation4], %s2067_s29  ;;  %s2199_s18 = int_to_ptr.vmem [resolvable:$true] %s1118_s18 }
 0x2cb   : > { %s1693_s7 = scalar_lea.vmem %s2199_s18, 512  ;;  %s1800_s20 = smov [#allocation10]  }
 0x2cc   : > { %p1694_p11 = scmp.ne.s32.totalorder %s2199_s18, %s1693_s7  ;;  %s1697_s23 = sshll.u32 %s1800_s20, 4  ;;  %s1698_s23 = int_to_ptr.vmem [resolvable:$false] %s1697_s23 }
 0x2cd   : > { %s1699_s25 = scalar_lea.vmem %s1698_s23, 1024  ;;  %p1700_p7 = scmp.lt.s32.totalorder %s2199_s18, %s1698_s23 }
 0x2ce   : > { %p1695_p2 = pnand %p1694_p11, %p2303_p1  ;;  %p1701_p3 = scmp.lt.s32.totalorder %s1699_s25, %s1693_s7 }
 0x2d0   : > { %p1696_p5 = pneg %p1695_p2  ;;  %p1702_p10 = por %p1701_p3, %p1700_p7 }
 0x2d2   : > { %p1703_p9 = pnand %p1702_p10, %p1696_p5 }
 0x385   : > { %v865_v0 = vpop.f32.mrb[4].mxu0 }
 0x386   : > { %1092 = vst.msk [vmem:[%s405_s16] sm:$0xff] %vm434_vm1, %v865_v0  ;;  %v1425_v3 = vpop.f32.mrb[5].mxu0 }
 0x389   : > { %v938_v4 = vpop.f32.mrb[4].mxu1 }
 0x38a   : > { %1093 = vst.msk [vmem:[%s405_s16 + $0x8] sm:$0xff] %vm434_vm1, %v938_v4  ;;  %v1011_v5 = vpop.f32.mrb[6].mxu0  ;;  %v1430_v6 = vpop.f32.mrb[5].mxu1 }
 0x38b   : > { %1094 = vst.msk [vmem:[%s405_s16 + $0x10] sm:$0xff] %vm434_vm1, %v1011_v5  ;;  %v1435_v7 = vpop.f32.mrb[7].mxu0 }
 0x38d   : > { %v1084_v8 = vpop.f32.mrb[6].mxu1 }
 0x38e   : > { %1095 = vst.msk [vmem:[%s405_s16 + $0x18] sm:$0xff] %vm434_vm1, %v1084_v8  ;;  %v1440_v9 = vpop.f32.mrb[7].mxu1 }
 0x38f   : > { %1706 = shalt.err (!%p1703_p9)
}
 0x390   : > { %s1707_s21 = scalar_lea.hbm %s2207_s1, 512  ;;  %s1711_s13 = scalar_lea.hbm %s2264_s4, 1024 }
 0x391   : > { %p1708_p12 = scmp.ne.s32.totalorder %s2207_s1, %s1707_s21  ;;  %p1712_p4 = scmp.lt.u32.totalorder %s2207_s1, %s2264_s4 }
 0x392   : > { %p1713_p6 = scmp.lt.u32.totalorder %s1711_s13, %s1707_s21  ;;  %p1715_p11 = scmp.lt.u32.totalorder %s1707_s21, %s2207_s1 }
 0x393   : > { %p1709_p8 = pnand %p1708_p12, %p2303_p1 }
 0x394   : > { %p1714_p13 = por %p1713_p6, %p1712_p4 }
 0x395   : > { %p1710_p0 = pneg %p1709_p8 }
 0x396   : > { %p1716_p2 = por %p1715_p11, %p1714_p13 }
 0x398   : > { %p1717_p5 = pnand %p1716_p2, %p1710_p0 }
 0x39a   : > { %1720 = shalt.err (!%p1717_p5)
}
 0x39b   : > { %1449 = dma.vmem_to_hbm [thread:$0]  (%p2303_p1), %s2199_s18, 512, %s2207_s1, %s1097_s27, %s1798_s11, %s1798_s11, %s1799_s26  }
 0x39c PF: > { %s2304_s15 = sld [smem:[#allocation18_spill]]  ;;  %s2305_s8 = sld [smem:[#allocation23_spill]] }
 0x39d   : > { %s2306_s12 = sld [smem:[#allocation20_spill]] }
 0x3a2   : > { %s1152_s17 = sand.u32 1, %s2304_s15   ;;  %p2307_p7 = scmp.ne.s32.totalorder %s2305_s8, 0 }
 0x3a3   : > { %p2308_p3 = scmp.ge.s32.totalorder %s2306_s12, 2  ;;  %s1153_s14 = scalar_lea.sflag [#allocation4], %s1152_s17 }
 0x3a5   : > { %p1467_p10 = pnand %p2308_p3, %p2307_p7 }
 0x3a7   : > { %1758 = dma.done.wait (!%p1467_p10), %s1153_s14, 512  }
 0x3a8   : > { %1760 = vsyncadd (!%p1467_p10), %s1153_s14, 4294966784  ;;  %s1162_s6 = scalar_lea.sflag [#allocation12], %s1152_s17 }
 0x3a9   : > { %1762 = dma.done.wait (!%p1467_p10), %s1162_s6, 512  }
 0x3aa   : > { %1764 = vsyncadd (!%p1467_p10), %s1162_s6, 4294966784  ;;  %s31_s23 = sadd.s32 1, %s2306_s12   ;;  %s2309_s29 = sld [smem:[#allocation19_spill]] }
 0x3ab   : > { %p28_p9 = scmp.ge.s32.totalorder %s31_s23, 4   ;;  %s2310_s20 = sld [smem:[#allocation22_spill]] }
 0x3ac   : > { %s2311_s11 = sld [smem:[#allocation21_spill]]  ;;  %s2312_s18 = smov %s1771_s19 }
 0x3ad   : > { %s2314_s21 = smov %s1783_s22  ;;  %30 = sbr.rel (!%p28_p9) target bundleno = 15 (0xf), region = 135 }
 0x3b0   : > { %s2313_s19 = smov %s2309_s29 }
 0x3b2   : > { %s2315_s22 = smov %s2311_s11 }
 0x3b4   :  { %1167 = vsyncpa [#allocation3], 1 }
 0x3b5   :  { %1169 = vsyncpa [#allocation3 + $0x1], 1 }
 0x3b6   :  { %1170 = vsyncpa [#allocation6], 1 }
 0x3b7   :  { %1172 = vsyncpa [#allocation6 + $0x1], 1 }
 0x3b8   :  { %1173 = vsyncpa [#allocation9], 1 }
 0x3b9   :  { %1175 = vsyncpa [#allocation9 + $0x1], 1 }
 0x3ba   :  { %1176 = vsyncpa [#allocation4], 1 }
 0x3bb   :  { %1178 = vsyncpa [#allocation4 + $0x1], 1 }
 0x3bc   :  { %1179 = vsyncpa [#allocation12], 1 }
 0x3bd   :  { %1181 = vsyncpa [#allocation12 + $0x1], 1 }

</bundles_post_ra>
